<compile_context>
chip_gen: v6e
topology: v6e:2x2x1
jax: 0.10.0
libtpu: 0.0.40
codegen_flags: <defaults>
</compile_context>

<pallas_src>
import functools

import jax
import jax.numpy as jnp
from jax.experimental import pallas as pl
from jax.experimental.pallas import tpu as pltpu


def _round_up(n, m):
    return ((n + m - 1) // m) * m


def _mlp_fused_kernel(n_layers, x_ref, *refs):
    """refs = (w_0, b_0, w_1, b_1, ..., w_{L-1}, b_{L-1}, o_ref).

    x_ref:  (tile_b, D0_pad) f32 batch tile (pipelined).
    w_l:    (Din_pad, Dout_pad) bf16, whole-array VMEM resident.
    b_l:    (1, Dout_pad) f32, whole-array VMEM resident.
    """
    o_ref = refs[-1]
    h = x_ref[...]                                            # f32 activations
    for l in range(n_layers):                                 # unrolled, n_layers small
        w = refs[2 * l][...]                                  # (Din_pad, Dout_pad) bf16
        b = refs[2 * l + 1][...]                              # (1, Dout_pad) f32
        y = jnp.dot(h.astype(w.dtype), w,
                    preferred_element_type=jnp.float32) + b   # MXU (bf16 in, f32 acc)
        # sigmoid via EUP: exp and approx-reciprocal both use the EUP slot.
        h = pl.reciprocal(1.0 + jnp.exp(-y), approx=True)
    o_ref[...] = h.astype(o_ref.dtype)


@functools.partial(jax.jit, static_argnames=("batch", "n_outputs", "tile_b"))
def ann_forward(x_pad, weights_t, biases_row, *, batch, n_outputs, tile_b):
    """Fused Pallas-backed ANN.forward on a pre-padded input.

    x_pad:       (B_pad, D_in_pad) f32, B_pad a multiple of tile_b (see prepare_input).
    weights_t:   tuple of padded (in_pad, out_pad) bf16 weights (pre-transposed).
    biases_row:  tuple of padded (1, out_pad) f32 biases.
    batch:       real (unpadded) batch size.
    n_outputs:   real (unpadded) output width.
    tile_b:      batch rows per grid step (256 for v6e/v7x, 128 for v5e).
    """
    n_layers = len(weights_t)
    b_pad, d_in_pad = x_pad.shape
    assert b_pad % tile_b == 0 and tile_b % 8 == 0
    d_out_pad = int(weights_t[-1].shape[1])
    n_tiles = b_pad // tile_b

    # Whole-array VMEM placement: single resident copy, no double buffering,
    # fetched once for the entire grid.
    resident_spec = pl.BlockSpec(memory_space=pltpu.MemorySpace.VMEM)

    in_specs = [pl.BlockSpec((tile_b, d_in_pad), lambda i: (i, 0))]
    args = [x_pad]
    flops = 0
    transcendentals = 0
    bytes_accessed = int(x_pad.size) * 4 + b_pad * d_out_pad * 4
    max_width = d_in_pad
    for w, b in zip(weights_t, biases_row):
        in_specs += [resident_spec, resident_spec]
        args += [w, b]
        flops += 2 * b_pad * int(w.shape[0]) * int(w.shape[1])
        transcendentals += b_pad * int(w.shape[1])
        bytes_accessed += int(w.size) * w.dtype.itemsize + int(b.size) * b.dtype.itemsize
        max_width = max(max_width, int(w.shape[1]))

    # Explicit VMEM budget: resident params (1 copy) + double-buffered activation
    # I/O tiles + rough live-value scratch, with headroom.  Clamped to 64 MiB so it
    # is valid on v7x (64 MiB physical) as well as v5e/v6e (128 MiB).
    weight_bytes = sum(int(w.size) * w.dtype.itemsize for w in weights_t)
    bias_bytes = sum(int(b.size) * b.dtype.itemsize for b in biases_row)
    io_bytes = 2 * tile_b * (d_in_pad + d_out_pad) * 4        # double-buffered x / out tiles
    act_bytes = 4 * tile_b * max_width * 4                    # h, h_bf16, y, exp(-y) working set
    needed = weight_bytes + bias_bytes + io_bytes + act_bytes
    vmem_limit = min(max(needed * 3 // 2 + (2 << 20), 32 << 20), 64 << 20)

    out_pad = pl.pallas_call(
        functools.partial(_mlp_fused_kernel, n_layers),
        out_shape=jax.ShapeDtypeStruct((b_pad, d_out_pad), jnp.float32),
        grid_spec=pltpu.PrefetchScalarGridSpec(
            num_scalar_prefetch=0,
            grid=(n_tiles,),
            in_specs=in_specs,
            out_specs=pl.BlockSpec((tile_b, d_out_pad), lambda i: (i, 0)),
        ),
        compiler_params=pltpu.CompilerParams(
            dimension_semantics=("parallel",),   # batch tiles independent -> megacore split
            vmem_limit_bytes=int(vmem_limit)),
        cost_estimate=pl.CostEstimate(
            flops=int(flops),
            transcendentals=int(transcendentals),
            bytes_accessed=int(bytes_accessed)),
    )(*args)

    return out_pad[:batch, :n_outputs]


def init_ann_params(key, n_inputs, n_hidden_layers, n_hidden_units, n_outputs):
    """Deterministic params matching ANN.__init__: xavier_normal_ weights, zero bias.

    Returns PyTorch-layout weights (out, in) and biases (out,)."""
    if n_hidden_layers == 0:
        dims = [(n_inputs, n_outputs)]
    else:
        dims = [(n_inputs, n_hidden_units)]
        dims += [(n_hidden_units, n_hidden_units)] * (n_hidden_layers - 1)
        dims += [(n_hidden_units, n_outputs)]

    weights, biases = [], []
    for (fan_in, fan_out) in dims:
        key, sub = jax.random.split(key)
        std = (2.0 / (fan_in + fan_out)) ** 0.5  # xavier normal, gain=1.0
        w = std * jax.random.normal(sub, (fan_out, fan_in), dtype=jnp.float32)
        b = jnp.zeros((fan_out,), dtype=jnp.float32)
        weights.append(w)
        biases.append(b)
    return weights, biases


def prepare_params(weights, biases, weight_dtype=jnp.bfloat16):
    """One-time prep (outside the hot path): transpose to (in, out), zero-pad feature
    dims to multiples of 128 lanes, cast weights to bf16 (halves HBM traffic and VMEM
    residency; MXU runs at native bf16 rate on v6e/v7x, with f32 accumulation).
    Padding rows/cols are exact zeros, so real output lanes are unchanged.
    (Feature widths here are < 128; for >=128-wide hidden layers on v6e/v7x, pad to
    256 multiples instead to fill the 256x256 MXU tiles.)"""
    weights_t, biases_row = [], []
    for w, b in zip(weights, biases):
        fan_out, fan_in = w.shape
        in_pad = _round_up(max(fan_in, 128), 128)
        out_pad = _round_up(max(fan_out, 128), 128)
        w_t = jnp.zeros((in_pad, out_pad), jnp.float32).at[:fan_in, :fan_out].set(
            jnp.asarray(w, jnp.float32).T).astype(weight_dtype)
        b_r = jnp.zeros((1, out_pad), jnp.float32).at[0, :fan_out].set(
            jnp.asarray(b, jnp.float32))
        weights_t.append(w_t)
        biases_row.append(b_r)
    return tuple(weights_t), tuple(biases_row)


def prepare_input(x, d_in_pad, tile_b=256):
    """Flatten (like x.view(B, -1)), cast to f32 and pad batch/features.  Kept out of
    the jitted forward so repeated inference can pre-pad once.  Returns the padded
    input and the batch tile size actually used (tile_b, or the 8-rounded batch if
    the batch is smaller than tile_b)."""
    B = x.shape[0]
    xf = jnp.asarray(x, jnp.float32).reshape(B, -1)
    tb = tile_b if B >= tile_b else _round_up(max(B, 8), 8)
    b_pad = _round_up(B, tb)
    x_pad = jnp.pad(xf, ((0, b_pad - B), (0, d_in_pad - xf.shape[1])))
    return x_pad, tb


def _reference_forward(x, weights, biases):
    B = x.shape[0]
    x = x.reshape(B, -1).astype(jnp.float32)
    for w, b in zip(weights, biases):
        x = jax.nn.sigmoid(x @ w.T + b)
    return x


if __name__ == "__main__":
    key = jax.random.PRNGKey(0)

    # Small shapes consistent with the module: flattened inputs -> sigmoid MLP.
    B = 2
    n_inputs = 64
    n_hidden_layers = 2
    n_hidden_units = 32
    n_outputs = 8

    key, kx, kp = jax.random.split(key, 3)
    x = jax.random.normal(kx, (B, n_inputs), dtype=jnp.float32)
    weights, biases = init_ann_params(
        kp, n_inputs, n_hidden_layers, n_hidden_units, n_outputs)

    # One-time transpose + pad + bf16 cast (kept out of the forward hot path).
    weights_t, biases_row = prepare_params(weights, biases)
    x_pad, tile_b = prepare_input(x, weights_t[0].shape[0], tile_b=256)

    out = ann_forward(x_pad, weights_t, biases_row,
                      batch=B, n_outputs=n_outputs, tile_b=tile_b)
    out = jax.block_until_ready(out)

    ref = _reference_forward(x, weights, biases)
    assert out.shape == (B, n_outputs), out.shape
    # Tolerance accounts for bf16 weights / bf16 matmul inputs (f32 accumulation)
    # and the EUP approx reciprocal in the sigmoid.
    assert jnp.allclose(out, ref, atol=3e-2, rtol=0), "mismatch vs reference"

    print("KERNEL_OK")
</pallas_src>

<mosaic_0001>
module attributes {stable_mosaic.version = 11 : i64} {
  func.func @_mlp_fused_kernel(%arg0: i32, %arg1: memref<8x128xf32, #tpu.memory_space<vmem>>, %arg2: memref<128x128xbf16, #tpu.memory_space<vmem>>, %arg3: memref<1x128xf32, #tpu.memory_space<vmem>>, %arg4: memref<128x128xbf16, #tpu.memory_space<vmem>>, %arg5: memref<1x128xf32, #tpu.memory_space<vmem>>, %arg6: memref<128x128xbf16, #tpu.memory_space<vmem>>, %arg7: memref<1x128xf32, #tpu.memory_space<vmem>>, %arg8: memref<8x128xf32, #tpu.memory_space<vmem>>) attributes {dimension_semantics = [#tpu.dimension_semantics<parallel>], iteration_bounds = array<i64: 1>, scalar_prefetch = 0 : i64, scratch_operands = 0 : i64, tpu.core_type = #tpu.core_type<tc>, window_params = [{transform_indices = @transform_0, window_bounds = array<i64: 8, 128>}, {pipeline_mode = #tpu.pipeline_mode<synchronous>, transform_indices = @transform_1, window_bounds = array<i64: 128, 128>}, {pipeline_mode = #tpu.pipeline_mode<synchronous>, transform_indices = @transform_2, window_bounds = array<i64: 1, 128>}, {pipeline_mode = #tpu.pipeline_mode<synchronous>, transform_indices = @transform_3, window_bounds = array<i64: 128, 128>}, {pipeline_mode = #tpu.pipeline_mode<synchronous>, transform_indices = @transform_4, window_bounds = array<i64: 1, 128>}, {pipeline_mode = #tpu.pipeline_mode<synchronous>, transform_indices = @transform_5, window_bounds = array<i64: 128, 128>}, {pipeline_mode = #tpu.pipeline_mode<synchronous>, transform_indices = @transform_6, window_bounds = array<i64: 1, 128>}, {transform_indices = @transform_7, window_bounds = array<i64: 8, 128>}]} {
    %c0 = arith.constant 0 : index
    %c0_0 = arith.constant 0 : index
    %0 = vector.load %arg1[%c0, %c0_0] : memref<8x128xf32, #tpu.memory_space<vmem>>, vector<8x128xf32>
    %c0_1 = arith.constant 0 : index
    %c0_2 = arith.constant 0 : index
    %1 = vector.load %arg2[%c0_1, %c0_2] : memref<128x128xbf16, #tpu.memory_space<vmem>>, vector<128x128xbf16>
    %c0_3 = arith.constant 0 : index
    %c0_4 = arith.constant 0 : index
    %2 = vector.load %arg3[%c0_3, %c0_4] : memref<1x128xf32, #tpu.memory_space<vmem>>, vector<1x128xf32>
    %3 = arith.truncf %0 : vector<8x128xf32> to vector<8x128xbf16>
    %cst = arith.constant dense<0.000000e+00> : vector<8x128xf32>
    %4 = tpu.matmul %3, %1, %cst {dimension_numbers = #tpu.dot_dimension_numbers<[1], [0], [0], [1], [0, 0, 1, 1], [], []>} : vector<8x128xbf16>, vector<128x128xbf16>, vector<8x128xf32> -> vector<8x128xf32>
    %5 = vector.broadcast %2 : vector<1x128xf32> to vector<8x128xf32>
    %6 = arith.addf %4, %5 : vector<8x128xf32>
    %cst_5 = arith.constant 0.000000e+00 : f32
    %7 = vector.broadcast %cst_5 : f32 to vector<8x128xf32>
    %8 = arith.subf %7, %6 : vector<8x128xf32>
    %9 = math.exp %8 : vector<8x128xf32>
    %cst_6 = arith.constant 1.000000e+00 : f32
    %10 = vector.broadcast %cst_6 : f32 to vector<8x128xf32>
    %11 = arith.addf %10, %9 : vector<8x128xf32>
    %12 = tpu.reciprocal %11 {approx = true} : vector<8x128xf32> -> vector<8x128xf32>
    %c0_7 = arith.constant 0 : index
    %c0_8 = arith.constant 0 : index
    %13 = vector.load %arg4[%c0_7, %c0_8] : memref<128x128xbf16, #tpu.memory_space<vmem>>, vector<128x128xbf16>
    %c0_9 = arith.constant 0 : index
    %c0_10 = arith.constant 0 : index
    %14 = vector.load %arg5[%c0_9, %c0_10] : memref<1x128xf32, #tpu.memory_space<vmem>>, vector<1x128xf32>
    %15 = arith.truncf %12 : vector<8x128xf32> to vector<8x128xbf16>
    %cst_11 = arith.constant dense<0.000000e+00> : vector<8x128xf32>
    %16 = tpu.matmul %15, %13, %cst_11 {dimension_numbers = #tpu.dot_dimension_numbers<[1], [0], [0], [1], [0, 0, 1, 1], [], []>} : vector<8x128xbf16>, vector<128x128xbf16>, vector<8x128xf32> -> vector<8x128xf32>
    %17 = vector.broadcast %14 : vector<1x128xf32> to vector<8x128xf32>
    %18 = arith.addf %16, %17 : vector<8x128xf32>
    %cst_12 = arith.constant 0.000000e+00 : f32
    %19 = vector.broadcast %cst_12 : f32 to vector<8x128xf32>
    %20 = arith.subf %19, %18 : vector<8x128xf32>
    %21 = math.exp %20 : vector<8x128xf32>
    %cst_13 = arith.constant 1.000000e+00 : f32
    %22 = vector.broadcast %cst_13 : f32 to vector<8x128xf32>
    %23 = arith.addf %22, %21 : vector<8x128xf32>
    %24 = tpu.reciprocal %23 {approx = true} : vector<8x128xf32> -> vector<8x128xf32>
    %c0_14 = arith.constant 0 : index
    %c0_15 = arith.constant 0 : index
    %25 = vector.load %arg6[%c0_14, %c0_15] : memref<128x128xbf16, #tpu.memory_space<vmem>>, vector<128x128xbf16>
    %c0_16 = arith.constant 0 : index
    %c0_17 = arith.constant 0 : index
    %26 = vector.load %arg7[%c0_16, %c0_17] : memref<1x128xf32, #tpu.memory_space<vmem>>, vector<1x128xf32>
    %27 = arith.truncf %24 : vector<8x128xf32> to vector<8x128xbf16>
    %cst_18 = arith.constant dense<0.000000e+00> : vector<8x128xf32>
    %28 = tpu.matmul %27, %25, %cst_18 {dimension_numbers = #tpu.dot_dimension_numbers<[1], [0], [0], [1], [0, 0, 1, 1], [], []>} : vector<8x128xbf16>, vector<128x128xbf16>, vector<8x128xf32> -> vector<8x128xf32>
    %29 = vector.broadcast %26 : vector<1x128xf32> to vector<8x128xf32>
    %30 = arith.addf %28, %29 : vector<8x128xf32>
    %cst_19 = arith.constant 0.000000e+00 : f32
    %31 = vector.broadcast %cst_19 : f32 to vector<8x128xf32>
    %32 = arith.subf %31, %30 : vector<8x128xf32>
    %33 = math.exp %32 : vector<8x128xf32>
    %cst_20 = arith.constant 1.000000e+00 : f32
    %34 = vector.broadcast %cst_20 : f32 to vector<8x128xf32>
    %35 = arith.addf %34, %33 : vector<8x128xf32>
    %36 = tpu.reciprocal %35 {approx = true} : vector<8x128xf32> -> vector<8x128xf32>
    %c0_21 = arith.constant 0 : index
    %c0_22 = arith.constant 0 : index
    %37 = vector.load %arg8[%c0_21, %c0_22] : memref<8x128xf32, #tpu.memory_space<vmem>>, vector<8x128xf32>
    tpu.vector_store %arg8[%c0_21, %c0_22], %36 {strides = array<i32>} : memref<8x128xf32, #tpu.memory_space<vmem>>, vector<8x128xf32>,
    return
  }
  func.func @transform_0(%arg0: i32) -> (i32, i32) {
    %c0_i32 = arith.constant 0 : i32
    %c0_i32_0 = arith.constant 0 : i32
    return %arg0, %c0_i32 : i32, i32
  }
  func.func @transform_1(%arg0: i32) -> (i32, i32) {
    %c0_i32 = arith.constant 0 : i32
    %c0_i32_0 = arith.constant 0 : i32
    %c0_i32_1 = arith.constant 0 : i32
    return %c0_i32, %c0_i32_0 : i32, i32
  }
  func.func @transform_2(%arg0: i32) -> (i32, i32) {
    %c0_i32 = arith.constant 0 : i32
    %c0_i32_0 = arith.constant 0 : i32
    %c0_i32_1 = arith.constant 0 : i32
    return %c0_i32, %c0_i32_0 : i32, i32
  }
  func.func @transform_3(%arg0: i32) -> (i32, i32) {
    %c0_i32 = arith.constant 0 : i32
    %c0_i32_0 = arith.constant 0 : i32
    %c0_i32_1 = arith.constant 0 : i32
    return %c0_i32, %c0_i32_0 : i32, i32
  }
  func.func @transform_4(%arg0: i32) -> (i32, i32) {
    %c0_i32 = arith.constant 0 : i32
    %c0_i32_0 = arith.constant 0 : i32
    %c0_i32_1 = arith.constant 0 : i32
    return %c0_i32, %c0_i32_0 : i32, i32
  }
  func.func @transform_5(%arg0: i32) -> (i32, i32) {
    %c0_i32 = arith.constant 0 : i32
    %c0_i32_0 = arith.constant 0 : i32
    %c0_i32_1 = arith.constant 0 : i32
    return %c0_i32, %c0_i32_0 : i32, i32
  }
  func.func @transform_6(%arg0: i32) -> (i32, i32) {
    %c0_i32 = arith.constant 0 : i32
    %c0_i32_0 = arith.constant 0 : i32
    %c0_i32_1 = arith.constant 0 : i32
    return %c0_i32, %c0_i32_0 : i32, i32
  }
  func.func @transform_7(%arg0: i32) -> (i32, i32) {
    %c0_i32 = arith.constant 0 : i32
    %c0_i32_0 = arith.constant 0 : i32
    return %arg0, %c0_i32 : i32, i32
  }
}

</mosaic_0001>

<bundles_post_ra>
// kernel: ann_forward.1
= control target key start
LH: loop header
LB: loop body
LE: loop exit
PB: predicated region body
PF: predicated region fallthrough
CT: control target
= control target key end

     0   :  { %12 = vsyncpa [#allocation3], 0  ;;  %s795_s0 = inlined_call_operand.hbm [shape: f32[8,128], index: 0, kind: input, shape index: {}]   ;;  %s796_s1 = inlined_call_operand.hbm [shape: bf16[128,128], index: 1, kind: input, shape index: {}]   ;;  %s797_s2 = inlined_call_operand.vmem [shape: f32[1,128], index: 2, kind: input, shape index: {}]   ;;  %s798_s3 = inlined_call_operand.hbm [shape: bf16[128,128], index: 3, kind: input, shape index: {}]   ;;  %s799_s4 = inlined_call_operand.vmem [shape: f32[1,128], index: 4, kind: input, shape index: {}]   ;;  %s800_s5 = inlined_call_operand.hbm [shape: bf16[128,128], index: 5, kind: input, shape index: {}]   ;;  %s801_s6 = inlined_call_operand.vmem [shape: f32[1,128], index: 6, kind: input, shape index: {}]   ;;  %s802_s7 = inlined_call_operand.vmem [shape: f32[8,128], index: 7, kind: output, shape index: {}]  }
   0x1   :  { %13 = vsyncpa [#allocation5], 0 }
   0x2   :  { %14 = vsyncpa [#allocation8], 0  ;;  %s684_s24 = smov [#allocation4]  }
   0x3   :  { %s30_s25 = sshll.u32 %s684_s24, 4  ;;  %s31_s25 = int_to_ptr.vmem [resolvable:$true] %s30_s25 }
   0x4   :  { %s606_s26 = scalar_lea.vmem %s31_s25, 1024  ;;  %p611_p1 = scmp.lt.s32.totalorder %s31_s25, %s31_s25 }
   0x5   :  { %p607_p0 = scmp.ne.s32.totalorder %s31_s25, %s606_s26  ;;  %p612_p2 = scmp.lt.s32.totalorder %s606_s26, %s606_s26 }
   0x7   :  { %p613_p3 = por %p612_p2, %p611_p1 }
   0x9   :  { %p614_p4 = pnand %p613_p3, %p607_p0 }
   0xb   :  { %617 = shalt.err (!%p614_p4)
}
   0xc   :  { %s685_s27 = smov 64   ;;  %s686_s28 = smov 4  }
   0xd   :  { %36 = dma.hbm_to_vmem [thread:$0]  %s796_s1, 1024, %s31_s25, [#allocation5], %s685_s27, %s685_s27, %s686_s28  }
   0xe   :  { %s687_s8 = smov [#allocation2]   ;;  %s688_s10 = smov [#allocation6]  }
   0xf   :  { %s21_s9 = sshll.u32 %s687_s8, 4  ;;  %s44_s11 = sshll.u32 %s688_s10, 4  ;;  %s22_s9 = int_to_ptr.vmem [resolvable:$true] %s21_s9  ;;  %s45_s11 = int_to_ptr.vmem [resolvable:$true] %s44_s11 }
  0x10   :  { %s626_s12 = scalar_lea.vmem %s22_s9, 128  ;;  %p631_p6 = scmp.lt.s32.totalorder %s22_s9, %s22_s9 }
  0x11   :  { %p627_p5 = scmp.ne.s32.totalorder %s22_s9, %s626_s12  ;;  %p632_p7 = scmp.lt.s32.totalorder %s626_s12, %s626_s12 }
  0x13   :  { %p633_p8 = por %p632_p7, %p631_p6 }
  0x15   :  { %p634_p9 = pnand %p633_p8, %p627_p5 }
  0x17   :  { %637 = shalt.err (!%p634_p9)
}
  0x18   :  { %24 = dma.hbm_to_vmem [thread:$0]  %s795_s0, 128, %s22_s9, [#allocation3]  }
  0x19   :  { %s646_s15 = scalar_lea.vmem %s45_s11, 1024  ;;  %p651_p11 = scmp.lt.s32.totalorder %s45_s11, %s45_s11 }
  0x1a   :  { %p647_p10 = scmp.ne.s32.totalorder %s45_s11, %s646_s15  ;;  %p652_p12 = scmp.lt.s32.totalorder %s646_s15, %s646_s15 }
  0x1c   :  { %p653_p13 = por %p652_p12, %p651_p11 }
  0x1e   :  { %p654_p0 = pnand %p653_p13, %p647_p10 }
  0x20   :  { %657 = shalt.err (!%p654_p0)
}
  0x21   :  { %50 = dma.hbm_to_vmem [thread:$0]  %s798_s3, 1024, %s45_s11, [#allocation5], %s685_s27, %s685_s27, %s686_s28  }
  0x22   :  { %s689_s17 = smov [#allocation7]  }
  0x23   :  { %s58_s18 = sshll.u32 %s689_s17, 4  ;;  %s59_s18 = int_to_ptr.vmem [resolvable:$true] %s58_s18 }
  0x24   :  { %s666_s19 = scalar_lea.vmem %s59_s18, 1024  ;;  %p671_p2 = scmp.lt.s32.totalorder %s59_s18, %s59_s18 }
  0x25   :  { %p667_p1 = scmp.ne.s32.totalorder %s59_s18, %s666_s19  ;;  %p672_p3 = scmp.lt.s32.totalorder %s666_s19, %s666_s19 }
  0x27   :  { %p673_p4 = por %p672_p3, %p671_p2 }
  0x29   :  { %p674_p5 = pnand %p673_p4, %p667_p1 }
  0x2b   :  { %677 = shalt.err (!%p674_p5)
}
  0x2c   :  { %64 = dma.hbm_to_vmem [thread:$0]  %s800_s5, 1024, %s59_s18, [#allocation8], %s685_s27, %s685_s27, %s686_s28  }
  0x2d   :  { %678 = dma.done.wait [#allocation3], 128  }
  0x2e   :  { %679 = vsyncadd [#allocation3], 4294967168 }
  0x2f   :  { %680 = dma.done.wait [#allocation5], 2048  }
  0x30   :  { %681 = vsyncadd [#allocation5], 4294965248 }
  0x31   :  { %682 = dma.done.wait [#allocation8], 1024  }
  0x32   :  { %683 = vsyncadd [#allocation8], 4294966272  ;;  %v690_v0 = vmov 0.0   ;;  %vm691_vm0 = vmmov 0   ;;  %v562_v1 = vld [vmem:[#allocation4 + $0x38] sm:$0xff]   ;;  %v563_v2 = vld [vmem:[#allocation4 + $0x30] sm:$0xff]  }
  0x33   :  { %494 = vmatprep.subr.bf16.mxu0 %v690_v0  ;;  %510 = vmatprep.mubr.msk.bf16.mxu0 %vm691_vm0, %v690_v0  ;;  %v564_v3 = vld [vmem:[#allocation4 + $0x28] sm:$0xff]   ;;  %v565_v4 = vld [vmem:[#allocation4 + $0x20] sm:$0xff]   ;;  %v566_v5 = vld [vmem:[#allocation4 + $0x18] sm:$0xff]  }
  0x34   :  { %514 = vmatprep.subr.bf16.mxu1 %v690_v0  ;;  %530 = vmatprep.mubr.msk.bf16.mxu1 %vm691_vm0, %v690_v0  ;;  %v567_v6 = vld [vmem:[#allocation4 + $0x10] sm:$0xff]   ;;  %v568_v7 = vld [vmem:[#allocation4 + $0x8] sm:$0xff]   ;;  %v569_v8 = vld [vmem:[#allocation4] sm:$0xff]  }
  0x35   :  { %495 = vmatpush3.bf16.msra.mxu0 %v562_v1  ;;  %v80_v9 = vld [vmem:[#allocation2] sm:$0xff]  ;;  %v571_v12 = vld [vmem:[#allocation6 + $0x30] sm:$0xff]   ;;  %v572_v13 = vld [vmem:[#allocation6 + $0x28] sm:$0xff]  }
  0x36   :  { %496 = vmatprep.subr.bf16.mxu0 %v690_v0  ;;  %v98_v10 = vpack.c.bf16 %v80_v9, %v80_v9  ;;  %v570_v11 = vld [vmem:[#allocation6 + $0x38] sm:$0xff]   ;;  %v573_v14 = vld [vmem:[#allocation6 + $0x20] sm:$0xff]   ;;  %v575_v16 = vld [vmem:[#allocation6 + $0x10] sm:$0xff]  }
  0x37   :  { %515 = vmatpush3.bf16.msra.mxu1 %v570_v11  ;;  %v574_v15 = vld [vmem:[#allocation6 + $0x18] sm:$0xff]   ;;  %v576_v17 = vld [vmem:[#allocation6 + $0x8] sm:$0xff]   ;;  %v577_v18 = vld [vmem:[#allocation6] sm:$0xff]  }
  0x38   :  { %516 = vmatprep.subr.bf16.mxu1 %v690_v0  ;;  %v440_v19 = vld [vmem:[%s797_s2] ss:$0 sm:$0xff]  ;;  %v579_v32 = vld [vmem:[#allocation7 + $0x30] sm:$0xff]   ;;  %v580_v33 = vld [vmem:[#allocation7 + $0x28] sm:$0xff]  }
  0x39   :  { %497 = vmatpush3.bf16.msra.mxu0 %v563_v2  ;;  %v578_v31 = vld [vmem:[#allocation7 + $0x38] sm:$0xff]   ;;  %v581_v34 = vld [vmem:[#allocation7 + $0x20] sm:$0xff]   ;;  %v583_v36 = vld [vmem:[#allocation7 + $0x10] sm:$0xff]  }
  0x3a   :  { %498 = vmatprep.subr.bf16.mxu0 %v690_v0  ;;  %v582_v35 = vld [vmem:[#allocation7 + $0x18] sm:$0xff]   ;;  %v584_v37 = vld [vmem:[#allocation7 + $0x8] sm:$0xff]   ;;  %v585_v38 = vld [vmem:[#allocation7] sm:$0xff]  }
  0x3b   :  { %517 = vmatpush3.bf16.msra.mxu1 %v571_v12  ;;  %v449_v39 = vld [vmem:[%s799_s4] ss:$0 sm:$0xff] }
  0x3c   :  { %518 = vmatprep.subr.bf16.mxu1 %v690_v0  ;;  %v458_v51 = vld [vmem:[%s801_s6] ss:$0 sm:$0xff] }
  0x3d   :  { %499 = vmatpush3.bf16.msra.mxu0 %v564_v3 }
  0x3e   :  { %500 = vmatprep.subr.bf16.mxu0 %v690_v0 }
  0x3f   :  { %519 = vmatpush3.bf16.msra.mxu1 %v572_v13 }
  0x40   :  { %520 = vmatprep.subr.bf16.mxu1 %v690_v0 }
  0x41   :  { %501 = vmatpush3.bf16.msra.mxu0 %v565_v4 }
  0x42   :  { %502 = vmatprep.subr.bf16.mxu0 %v690_v0 }
  0x43   :  { %521 = vmatpush3.bf16.msra.mxu1 %v573_v14 }
  0x44   :  { %522 = vmatprep.subr.bf16.mxu1 %v690_v0 }
  0x45   :  { %503 = vmatpush3.bf16.msra.mxu0 %v566_v5 }
  0x46   :  { %504 = vmatprep.subr.bf16.mxu0 %v690_v0 }
  0x47   :  { %523 = vmatpush3.bf16.msra.mxu1 %v574_v15 }
  0x48   :  { %524 = vmatprep.subr.bf16.mxu1 %v690_v0 }
  0x49   :  { %505 = vmatpush3.bf16.msra.mxu0 %v567_v6 }
  0x4a   :  { %506 = vmatprep.subr.bf16.mxu0 %v690_v0 }
  0x4b   :  { %525 = vmatpush3.bf16.msra.mxu1 %v575_v16 }
  0x4c   :  { %526 = vmatprep.subr.bf16.mxu1 %v690_v0 }
  0x4d   :  { %507 = vmatpush3.bf16.msra.mxu0 %v568_v7 }
  0x4e   :  { %508 = vmatprep.subr.bf16.mxu0 %v690_v0 }
  0x4f   :  { %527 = vmatpush3.bf16.msra.mxu1 %v576_v17 }
  0x50   :  { %528 = vmatprep.subr.bf16.mxu1 %v690_v0 }
  0x51   :  { %509 = vmatpush3.bf16.msra.mxu0 %v569_v8 }
  0x52   :  { %534 = vmatprep.subr.bf16.mxu0 %v690_v0 }
  0x53   :  { %529 = vmatpush3.bf16.msra.mxu1 %v577_v18 }
  0x54   :  { %511 = vmatmul.mubr.bf16.vlgmr.msra.gmra.mxu0 %v98_v10 }
  0x55   :  { %550 = vmatprep.mubr.msk.bf16.mxu0 %vm691_vm0, %v690_v0  ;;  %535 = vmatpush3.bf16.msra.mxu0 %v578_v31 }
  0x56   :  { %536 = vmatprep.subr.bf16.mxu0 %v690_v0 }
  0x59   :  { %537 = vmatpush3.bf16.msra.mxu0 %v579_v32 }
  0x5a   :  { %538 = vmatprep.subr.bf16.mxu0 %v690_v0 }
  0x5d   :  { %539 = vmatpush3.bf16.msra.mxu0 %v580_v33 }
  0x5e   :  { %540 = vmatprep.subr.bf16.mxu0 %v690_v0 }
  0x61   :  { %541 = vmatpush3.bf16.msra.mxu0 %v581_v34 }
  0x62   :  { %542 = vmatprep.subr.bf16.mxu0 %v690_v0 }
  0x65   :  { %543 = vmatpush3.bf16.msra.mxu0 %v582_v35 }
  0x66   :  { %544 = vmatprep.subr.bf16.mxu0 %v690_v0 }
  0x69   :  { %545 = vmatpush3.bf16.msra.mxu0 %v583_v36 }
  0x6a   :  { %546 = vmatprep.subr.bf16.mxu0 %v690_v0 }
  0x6d   :  { %547 = vmatpush3.bf16.msra.mxu0 %v584_v37 }
  0x6e   :  { %548 = vmatprep.subr.bf16.mxu0 %v690_v0 }
  0x71   :  { %549 = vmatpush3.bf16.msra.mxu0 %v585_v38 }
 0x114   :  { %v187_v20 = vpop.f32.mrf.mxu0 }
 0x115   :  { %v188_v21 = vadd.f32 %v440_v19, %v187_v20 }
 0x116   :  { %v512_v22 = vpop.f32.mrf.mxu0 }
 0x117   :  { %v193_v23 = vsub.f32 0.0, %v188_v21 }
 0x118   :  { %v190_v24 = vpop.f32.mrf.mxu0 }
 0x119   :  { %v194_v25 = vmul.f32 1.442695, %v193_v23 }
 0x11a   :  { %v513_v26 = vpop.f32.mrf.mxu0 }
 0x11b   :  { %586 = vpow2.f32 %v194_v25 }
 0x128   :  { %v587_v27 = vpop.eup %586 }
 0x129   :  { %v196_v28 = vadd.f32 1.0, %v587_v27 }
 0x12b   :  { %588 = vrcp.f32 %v196_v28 }
 0x138   :  { %v589_v29 = vpop.eup %588 }
 0x139   :  { %v215_v30 = vpack.c.bf16 %v589_v29, %v589_v29 }
 0x13b   :  { %531 = vmatmul.mubr.bf16.vlgmr.msra.gmra.mxu1 %v215_v30 }
 0x1fb   :  { %v304_v40 = vpop.f32.mrf.mxu1 }
 0x1fc   :  { %v305_v41 = vadd.f32 %v449_v39, %v304_v40 }
 0x1fd   :  { %v532_v42 = vpop.f32.mrf.mxu1 }
 0x1fe   :  { %v310_v43 = vsub.f32 0.0, %v305_v41 }
 0x1ff   :  { %v307_v44 = vpop.f32.mrf.mxu1 }
 0x200   :  { %v311_v45 = vmul.f32 1.442695, %v310_v43 }
 0x201   :  { %v533_v46 = vpop.f32.mrf.mxu1 }
 0x202   :  { %590 = vpow2.f32 %v311_v45 }
 0x20f   :  { %v591_v47 = vpop.eup %590 }
 0x210   :  { %v313_v48 = vadd.f32 1.0, %v591_v47 }
 0x212   :  { %592 = vrcp.f32 %v313_v48 }
 0x21f   :  { %v593_v49 = vpop.eup %592 }
 0x220   :  { %v332_v50 = vpack.c.bf16 %v593_v49, %v593_v49 }
 0x222   :  { %551 = vmatmul.mubr.bf16.vlgmr.msra.gmra.mxu0 %v332_v50 }
 0x2e2   :  { %v421_v52 = vpop.f32.mrf.mxu0 }
 0x2e3   :  { %v422_v53 = vadd.f32 %v458_v51, %v421_v52 }
 0x2e4   :  { %v552_v54 = vpop.f32.mrf.mxu0 }
 0x2e5   :  { %v427_v55 = vsub.f32 0.0, %v422_v53 }
 0x2e6   :  { %v424_v56 = vpop.f32.mrf.mxu0 }
 0x2e7   :  { %v428_v57 = vmul.f32 1.442695, %v427_v55 }
 0x2e8   :  { %v553_v58 = vpop.f32.mrf.mxu0 }
 0x2e9   :  { %594 = vpow2.f32 %v428_v57 }
 0x2f6   :  { %v595_v59 = vpop.eup %594 }
 0x2f7   :  { %v430_v60 = vadd.f32 1.0, %v595_v59 }
 0x2f9   :  { %596 = vrcp.f32 %v430_v60 }
 0x306   :  { %v597_v61 = vpop.eup %596 }
 0x307   :  { %432 = vst [vmem:[%s802_s7] sm:$0xff] %v597_v61 }
 0x308   :  { %437 = vsyncpa [#allocation3], 1 }
 0x309   :  { %438 = vsyncpa [#allocation5], 1 }
 0x30a   :  { %439 = vsyncpa [#allocation8], 1 }

</bundles_post_ra>
